<compile_context>
chip_gen: v6e
topology: v6e:2x2x1
jax: 0.10.0
libtpu: 0.0.40
codegen_flags: <defaults>
</compile_context>

<pallas_src>
import functools

import jax
import jax.numpy as jnp
from jax import lax
from jax.experimental import pallas as pl
from jax.experimental.pallas import tpu as pltpu


# ----------------------------------------------------------------------------
# Kernel
# ----------------------------------------------------------------------------
def _border_kernel(x_ref, max_ref, min_ref, *, tn, th, npg, n_blocks, hw_tiles,
                   n_tail, hw_tail, lo, hi):
    """Fold per-channel max/min of (tn, C, th) tiles of x = (N, C, H*W).

    grid = (groups, n_blocks_per_group, hw_tiles).  Axis 0 is 'parallel'
    (one resident (1, 1, C) output block per group); axes 1/2 are reduction
    axes folding into that block.  Only the (cold) tail grid steps run any
    masking / slicing; the hot loop is just max + min.
    """
    g = pl.program_id(0)
    i = pl.program_id(1)
    j = pl.program_id(2)

    mask_n = (n_tail != tn)      # static: N not divisible by tn
    mask_hw = (hw_tail != th)    # static: H*W not divisible by th

    def part(t_max, t_min):
        # Lane-reduce first (XLU slot is idle in this HBM-bound kernel), then
        # fold rows.  Keeps live intermediates at (rows, C) / (1, C) and the
        # result lane-dense, matching the (1, 1, C) output block.
        pm = jnp.max(jnp.max(t_max, axis=-1), axis=0, keepdims=True)  # (1, C)
        pn = jnp.min(jnp.min(t_min, axis=-1), axis=0, keepdims=True)  # (1, C)
        return pm, pn

    def reduce_tile(rows, tail_hw):
        if not tail_hw:
            t = x_ref[:rows, :, :]
            return part(t, t)
        # H*W tail: reduce the 128-aligned valid prefix unmasked; mask only
        # the final partial 128-lane chunk with a broadcast-shaped lane mask.
        aligned = (hw_tail // 128) * 128
        maxs, mins = [], []
        if aligned > 0:
            t = x_ref[:rows, :, :aligned]
            pm, pn = part(t, t)
            maxs.append(pm)
            mins.append(pn)
        rem = hw_tail - aligned
        if rem > 0:
            sub = x_ref[:rows, :, aligned:aligned + 128]
            col = lax.broadcasted_iota(jnp.int32, (1, 1, 128), 2) < rem
            pm, pn = part(jnp.where(col, sub, lo), jnp.where(col, sub, hi))
            maxs.append(pm)
            mins.append(pn)
        tmax = maxs[0] if len(maxs) == 1 else jnp.maximum(maxs[0], maxs[1])
        tmin = mins[0] if len(mins) == 1 else jnp.minimum(mins[0], mins[1])
        return tmax, tmin

    def accumulate(rows, tail_hw):
        tmax, tmin = reduce_tile(rows, tail_hw)
        first = jnp.logical_and(i == 0, j == 0)

        @pl.when(first)
        def _():
            max_ref[0] = tmax
            min_ref[0] = tmin

        @pl.when(jnp.logical_not(first))
        def _():
            max_ref[0] = jnp.maximum(max_ref[0], tmax)
            min_ref[0] = jnp.minimum(min_ref[0], tmin)

    def emit(pred, rows, tail_hw):
        if pred is None:
            accumulate(rows, tail_hw)
        else:
            pl.when(pred)(lambda: accumulate(rows, tail_hw))

    # Runtime tail predicates — only built for dims that are actually ragged.
    # Clamped redundant steps (see wrapper) re-read the last N block; max/min
    # are idempotent so they fold in harmlessly, and `>=` routes them through
    # the same branch as the genuine tail block.
    is_n_tail = ((g * npg + i) >= (n_blocks - 1)) if mask_n else None
    is_hw_tail = (j == hw_tiles - 1) if mask_hw else None

    if not mask_n and not mask_hw:
        emit(None, tn, False)
    elif mask_n and not mask_hw:
        emit(jnp.logical_not(is_n_tail), tn, False)
        emit(is_n_tail, n_tail, False)
    elif mask_hw and not mask_n:
        emit(jnp.logical_not(is_hw_tail), tn, False)
        emit(is_hw_tail, tn, True)
    else:
        not_n = jnp.logical_not(is_n_tail)
        not_h = jnp.logical_not(is_hw_tail)
        emit(jnp.logical_and(not_n, not_h), tn, False)
        emit(jnp.logical_and(is_n_tail, not_h), n_tail, False)
        emit(jnp.logical_and(not_n, is_hw_tail), tn, True)
        emit(jnp.logical_and(is_n_tail, is_hw_tail), n_tail, True)


# ----------------------------------------------------------------------------
# Wrapper helpers
# ----------------------------------------------------------------------------
def _vmem_capacity_bytes():
    try:
        return int(pltpu.get_tpu_info().vmem_capacity_bytes)
    except Exception:
        return 64 * 1024 * 1024  # conservative (v7x per-TC physical VMEM)


def _num_tensorcores():
    """Best-effort TensorCores-per-chip (1 on v5e/v6e, 2 on v7x); default 1."""
    try:
        info = pltpu.get_tpu_info()
        for attr in ("num_cores", "core_count", "num_tensorcores",
                     "tensorcores_per_chip"):
            v = getattr(info, attr, None)
            if v:
                return max(1, min(2, int(v)))
    except Exception:
        pass
    try:
        v = getattr(jax.devices()[0], "num_cores", None)
        if v:
            return max(1, min(2, int(v)))
    except Exception:
        pass
    return 1  # safe default: no redundant group split on single-TC parts


def _choose_tiles(n, c, hw, itemsize, target_bytes):
    """Pick (tn, th) so one (tn, C, th) block is ~target_bytes and lane-dense."""
    slab = c * hw * itemsize                    # one full (C, H*W) slice
    if slab <= target_bytes:
        th = hw                                 # full last dim
        tn = max(1, min(n, target_bytes // max(slab, 1)))
    else:
        if hw >= 128:
            cols = max(128, (target_bytes // max(c * itemsize, 1)) // 128 * 128)
            th = min(cols, (hw // 128) * 128)   # multiple of 128
        else:
            # C is never tiled; for typical conv activations (moderate C) a
            # full (C, hw) slab with hw < 128 fits comfortably in VMEM.
            th = hw
        tn = 1
    return int(tn), int(th)


def _fill_values(dtype):
    """Dtype-appropriate identities for max/min masking (works for ints too)."""
    if jnp.issubdtype(dtype, jnp.floating):
        return float("-inf"), float("inf")
    info = jnp.iinfo(dtype)
    return int(info.min), int(info.max)


def _border_stats(x_nchw, run_max=None, run_min=None, *, target_block_bytes=None):
    """Per-channel amax/amin over (N, H, W), folded with optional running stats."""
    n, c, h, w = x_nchw.shape
    hw = h * w
    x3 = jnp.reshape(x_nchw, (n, c, hw))        # free for contiguous NCHW
    itemsize = x3.dtype.itemsize

    vmem_cap = _vmem_capacity_bytes()
    # Scoped-VMEM ceiling: physical minus ~16 MiB headroom (v7x: 48 MiB,
    # v5e/v6e: 112 MiB).
    vmem_limit = int(min(max(vmem_cap - (16 << 20), 32 << 20), 112 << 20))
    if target_block_bytes is None:
        # Double-buffered input dominates VMEM (reduction temps are tiny), so
        # ~1/3 of the ceiling per block: ~13 MiB on v7x, 32 MiB on v5e/v6e.
        target_block_bytes = int(min(32 << 20, (vmem_limit - (8 << 20)) // 3))

    tn, th = _choose_tiles(n, c, hw, itemsize, target_block_bytes)
    n_blocks = int(pl.cdiv(n, tn))
    hw_tiles = int(pl.cdiv(hw, th))

    # Split the N-block range across TensorCores only on multi-TC chips (v7x).
    # On v5e/v6e the split would just be a serial loop plus possibly one
    # redundant block of HBM traffic, so keep a single group there.
    num_tc = _num_tensorcores()
    if num_tc >= 2 and n_blocks < 2 and n >= 2:
        tn = int(pl.cdiv(n, 2))                 # force a 2-way split to exist
        n_blocks = int(pl.cdiv(n, tn))
    num_groups = 2 if (num_tc >= 2 and n_blocks >= 2) else 1
    npg = int(pl.cdiv(n_blocks, num_groups))
    clamp = (num_groups * npg != n_blocks)      # last group re-reads last block

    n_tail = n - (n_blocks - 1) * tn            # valid rows in the last N block
    hw_tail = hw - (hw_tiles - 1) * th          # valid cols in the last HW tile
    lo, hi = _fill_values(x3.dtype)

    def x_index_map(g, i, j):
        nb = g * npg + i
        if clamp:
            nb = jnp.minimum(nb, n_blocks - 1)  # redundant steps: idempotent re-read
        return (nb, 0, j)

    def out_index_map(g, i, j):
        return (g, 0, 0)

    kernel = functools.partial(
        _border_kernel, tn=tn, th=th, npg=npg, n_blocks=n_blocks,
        hw_tiles=hw_tiles, n_tail=n_tail, hw_tail=hw_tail, lo=lo, hi=hi)

    cost = pl.CostEstimate(
        flops=2 * x3.size,                      # one max + one min per element
        transcendentals=0,
        bytes_accessed=x3.size * itemsize + 4 * num_groups * c * itemsize)

    raw_max, raw_min = pl.pallas_call(
        kernel,
        out_shape=(
            jax.ShapeDtypeStruct((num_groups, 1, c), x3.dtype),
            jax.ShapeDtypeStruct((num_groups, 1, c), x3.dtype),
        ),
        grid_spec=pltpu.PrefetchScalarGridSpec(
            num_scalar_prefetch=0,
            grid=(num_groups, npg, hw_tiles),
            in_specs=[pl.BlockSpec((tn, c, th), x_index_map)],
            out_specs=[
                pl.BlockSpec((1, 1, c), out_index_map),
                pl.BlockSpec((1, 1, c), out_index_map),
            ],
        ),
        compiler_params=pltpu.CompilerParams(
            dimension_semantics=("parallel", "arbitrary", "arbitrary"),
            vmem_limit_bytes=vmem_limit,
        ),
        cost_estimate=cost,
    )(x3)

    cur_max = jnp.max(raw_max[:, 0, :], axis=0)   # (C,) combine group partials
    cur_min = jnp.min(raw_min[:, 0, :], axis=0)

    if run_max is not None:
        cur_max = jnp.maximum(cur_max, run_max)
    if run_min is not None:
        cur_min = jnp.minimum(cur_min, run_min)
    return cur_max, cur_min


# ----------------------------------------------------------------------------
# Module wrapper (stateful maxQ/minQ like the PyTorch module)
# ----------------------------------------------------------------------------
class SimpleQunActPallas:
    allLayer = []

    def __init__(self, bit=8, mode="forward", function="None", name=""):
        self.bit = bit
        self.mode = mode
        self.func = function
        self.name = name
        self.maxQ = None   # shape (C,) once set
        self.minQ = None
        SimpleQunActPallas.allLayer.append(self)

    # TODO(synk): load_min_max does file I/O (torch.load); no Pallas equivalent.

    def __call__(self, x):
        if self.mode == "forward":
            return x
        if self.mode == "monitor":
            if self.func == "Border":
                new_max, new_min = _border_stats(x, self.maxQ, self.minQ)
                self.maxQ = new_max
                self.minQ = new_min
                return x
        if self.mode == "quan":
            # TODO(synk): reference module returns x unchanged in 'quan' mode
            # (quantization math is not implemented there).
            return x
        return x


if __name__ == "__main__":
    key = jax.random.PRNGKey(0)
    N, C, H, W = 2, 4, 16, 16
    x = jax.random.normal(key, (N, C, H, W), dtype=jnp.float32)

    # 'forward' mode: identity.
    layer_fwd = SimpleQunActPallas(mode="forward", name="act0")
    y = layer_fwd(x)
    jax.block_until_ready(y)
    assert y.shape == x.shape and bool(jnp.all(y == x))

    # 'monitor' + 'Border': running per-channel max/min over (0, 2, 3).
    layer_mon = SimpleQunActPallas(mode="monitor", function="Border", name="act1")
    y1 = layer_mon(x)                       # first call: maxQ/minQ from None
    x2 = jax.random.normal(jax.random.PRNGKey(1), (N, C, H, W), dtype=jnp.float32)
    y2 = layer_mon(x2)                      # second call: running update
    jax.block_until_ready((y1, y2, layer_mon.maxQ, layer_mon.minQ))

    ref_max = jnp.maximum(jnp.max(x, axis=(0, 2, 3)), jnp.max(x2, axis=(0, 2, 3)))
    ref_min = jnp.minimum(jnp.min(x, axis=(0, 2, 3)), jnp.min(x2, axis=(0, 2, 3)))
    assert bool(jnp.all(y1 == x)) and bool(jnp.all(y2 == x2))
    assert jnp.allclose(layer_mon.maxQ, ref_max)
    assert jnp.allclose(layer_mon.minQ, ref_min)

    # Ragged H*W tail: small block budget forces hw tiling (th=128, tail=44),
    # exercising the masked 128-lane chunk path.
    x3 = jax.random.normal(jax.random.PRNGKey(2), (3, 4, 15, 20), dtype=jnp.float32)
    rm = jnp.full((4,), -0.5, dtype=jnp.float32)
    rn = jnp.full((4,), 0.5, dtype=jnp.float32)
    got_max, got_min = _border_stats(x3, rm, rn, target_block_bytes=2048)
    jax.block_until_ready((got_max, got_min))
    ref_max3 = jnp.maximum(jnp.max(x3, axis=(0, 2, 3)), rm)
    ref_min3 = jnp.minimum(jnp.min(x3, axis=(0, 2, 3)), rn)
    assert jnp.allclose(got_max, ref_max3)
    assert jnp.allclose(got_min, ref_min3)

    # Ragged N tail: N=5 with tn=2 (last block has 1 valid row), exercising the
    # static-row-slice tail branch.
    x4 = jax.random.normal(jax.random.PRNGKey(3), (5, 8, 4, 4), dtype=jnp.float32)
    got_max4, got_min4 = _border_stats(x4, None, None, target_block_bytes=1024)
    jax.block_until_ready((got_max4, got_min4))
    assert jnp.allclose(got_max4, jnp.max(x4, axis=(0, 2, 3)))
    assert jnp.allclose(got_min4, jnp.min(x4, axis=(0, 2, 3)))

    print("KERNEL_OK")
</pallas_src>

<mosaic_0001>
module attributes {stable_mosaic.version = 11 : i64} {
  func.func @_border_kernel(%arg0: i32, %arg1: i32, %arg2: i32, %arg3: memref<2x4x256xf32, #tpu.memory_space<vmem>>, %arg4: memref<1x1x4xf32, #tpu.memory_space<vmem>>, %arg5: memref<1x1x4xf32, #tpu.memory_space<vmem>>) attributes {dimension_semantics = [#tpu.dimension_semantics<parallel>, #tpu.dimension_semantics<arbitrary>, #tpu.dimension_semantics<arbitrary>], iteration_bounds = array<i64: 1, 1, 1>, scalar_prefetch = 0 : i64, scratch_operands = 0 : i64, tpu.core_type = #tpu.core_type<tc>, window_params = [{transform_indices = @transform_0, window_bounds = array<i64: 2, 4, 256>}, {transform_indices = @transform_1, window_bounds = array<i64: 1, 1, 4>}, {transform_indices = @transform_2, window_bounds = array<i64: 1, 1, 4>}]} {
    %c0 = arith.constant 0 : index
    %c0_0 = arith.constant 0 : index
    %c0_1 = arith.constant 0 : index
    %0 = vector.load %arg3[%c0, %c0_0, %c0_1] : memref<2x4x256xf32, #tpu.memory_space<vmem>>, vector<2x4x256xf32>
    %cst = arith.constant dense<0xFF800000> : vector<2x4xf32>
    %1 = vector.multi_reduction <maximumf>, %0, %cst [2] : vector<2x4x256xf32> to vector<2x4xf32>
    %cst_2 = arith.constant dense<0xFF800000> : vector<4xf32>
    %2 = vector.multi_reduction <maximumf>, %1, %cst_2 [0] : vector<2x4xf32> to vector<4xf32>
    %3 = vector.shape_cast %2 : vector<4xf32> to vector<1x4xf32>
    %cst_3 = arith.constant dense<0x7F800000> : vector<2x4xf32>
    %4 = vector.multi_reduction <minimumf>, %0, %cst_3 [2] : vector<2x4x256xf32> to vector<2x4xf32>
    %cst_4 = arith.constant dense<0x7F800000> : vector<4xf32>
    %5 = vector.multi_reduction <minimumf>, %4, %cst_4 [0] : vector<2x4xf32> to vector<4xf32>
    %6 = vector.shape_cast %5 : vector<4xf32> to vector<1x4xf32>
    %c0_i32 = arith.constant 0 : i32
    %7 = arith.cmpi eq, %arg1, %c0_i32 : i32
    %c0_i32_5 = arith.constant 0 : i32
    %8 = arith.cmpi eq, %arg2, %c0_i32_5 : i32
    %9 = arith.andi %7, %8 : i1
    %10 = arith.extui %9 : i1 to i32
    %c0_i32_6 = arith.constant 0 : i32
    %11 = arith.cmpi ne, %10, %c0_i32_6 : i32
    scf.if %11 {
      %c0_8 = arith.constant 0 : index
      %c0_9 = arith.constant 0 : index
      %c0_10 = arith.constant 0 : index
      %15 = vector.load %arg4[%c0_8, %c0_9, %c0_10] : memref<1x1x4xf32, #tpu.memory_space<vmem>>, vector<1x1x4xf32>
      %16 = vector.shape_cast %15 : vector<1x1x4xf32> to vector<1x4xf32>
      %17 = vector.shape_cast %3 : vector<1x4xf32> to vector<1x1x4xf32>
      tpu.vector_store %arg4[%c0_8, %c0_9, %c0_10], %17 {strides = array<i32>} : memref<1x1x4xf32, #tpu.memory_space<vmem>>, vector<1x1x4xf32>,
      %c0_11 = arith.constant 0 : index
      %c0_12 = arith.constant 0 : index
      %c0_13 = arith.constant 0 : index
      %18 = vector.load %arg5[%c0_11, %c0_12, %c0_13] : memref<1x1x4xf32, #tpu.memory_space<vmem>>, vector<1x1x4xf32>
      %19 = vector.shape_cast %18 : vector<1x1x4xf32> to vector<1x4xf32>
      %20 = vector.shape_cast %6 : vector<1x4xf32> to vector<1x1x4xf32>
      tpu.vector_store %arg5[%c0_11, %c0_12, %c0_13], %20 {strides = array<i32>} : memref<1x1x4xf32, #tpu.memory_space<vmem>>, vector<1x1x4xf32>,
    } else {
    }
    %true = arith.constant true
    %12 = arith.xori %9, %true : i1
    %13 = arith.extui %12 : i1 to i32
    %c0_i32_7 = arith.constant 0 : i32
    %14 = arith.cmpi ne, %13, %c0_i32_7 : i32
    scf.if %14 {
      %c0_8 = arith.constant 0 : index
      %c0_9 = arith.constant 0 : index
      %c0_10 = arith.constant 0 : index
      %15 = vector.load %arg4[%c0_8, %c0_9, %c0_10] : memref<1x1x4xf32, #tpu.memory_space<vmem>>, vector<1x1x4xf32>
      %16 = vector.shape_cast %15 : vector<1x1x4xf32> to vector<1x4xf32>
      %17 = arith.maximumf %16, %3 : vector<1x4xf32>
      %c0_11 = arith.constant 0 : index
      %c0_12 = arith.constant 0 : index
      %c0_13 = arith.constant 0 : index
      %18 = vector.load %arg4[%c0_11, %c0_12, %c0_13] : memref<1x1x4xf32, #tpu.memory_space<vmem>>, vector<1x1x4xf32>
      %19 = vector.shape_cast %18 : vector<1x1x4xf32> to vector<1x4xf32>
      %20 = vector.shape_cast %17 : vector<1x4xf32> to vector<1x1x4xf32>
      tpu.vector_store %arg4[%c0_11, %c0_12, %c0_13], %20 {strides = array<i32>} : memref<1x1x4xf32, #tpu.memory_space<vmem>>, vector<1x1x4xf32>,
      %c0_14 = arith.constant 0 : index
      %c0_15 = arith.constant 0 : index
      %c0_16 = arith.constant 0 : index
      %21 = vector.load %arg5[%c0_14, %c0_15, %c0_16] : memref<1x1x4xf32, #tpu.memory_space<vmem>>, vector<1x1x4xf32>
      %22 = vector.shape_cast %21 : vector<1x1x4xf32> to vector<1x4xf32>
      %23 = arith.minimumf %22, %6 : vector<1x4xf32>
      %c0_17 = arith.constant 0 : index
      %c0_18 = arith.constant 0 : index
      %c0_19 = arith.constant 0 : index
      %24 = vector.load %arg5[%c0_17, %c0_18, %c0_19] : memref<1x1x4xf32, #tpu.memory_space<vmem>>, vector<1x1x4xf32>
      %25 = vector.shape_cast %24 : vector<1x1x4xf32> to vector<1x4xf32>
      %26 = vector.shape_cast %23 : vector<1x4xf32> to vector<1x1x4xf32>
      tpu.vector_store %arg5[%c0_17, %c0_18, %c0_19], %26 {strides = array<i32>} : memref<1x1x4xf32, #tpu.memory_space<vmem>>, vector<1x1x4xf32>,
    } else {
    }
    return
  }
  func.func @transform_0(%arg0: i32, %arg1: i32, %arg2: i32) -> (i32, i32, i32) {
    %c1_i32 = arith.constant 1 : i32
    %0 = arith.muli %arg0, %c1_i32 : i32
    %1 = arith.addi %0, %arg1 : i32
    %c0_i32 = arith.constant 0 : i32
    %c0_i32_0 = arith.constant 0 : i32
    return %1, %c0_i32, %arg2 : i32, i32, i32
  }
  func.func @transform_1(%arg0: i32, %arg1: i32, %arg2: i32) -> (i32, i32, i32) {
    %c0_i32 = arith.constant 0 : i32
    %c0_i32_0 = arith.constant 0 : i32
    %c0_i32_1 = arith.constant 0 : i32
    return %arg0, %c0_i32, %c0_i32_0 : i32, i32, i32
  }
  func.func @transform_2(%arg0: i32, %arg1: i32, %arg2: i32) -> (i32, i32, i32) {
    %c0_i32 = arith.constant 0 : i32
    %c0_i32_0 = arith.constant 0 : i32
    %c0_i32_1 = arith.constant 0 : i32
    return %arg0, %c0_i32, %c0_i32_0 : i32, i32, i32
  }
}

</mosaic_0001>

<bundles_post_ra>
// kernel: tpu_custom_call.1
= control target key start
LH: loop header
LB: loop body
LE: loop exit
PB: predicated region body
PF: predicated region fallthrough
CT: control target
= control target key end

     0   :  { %8 = vsyncpa [#allocation3], 0  ;;  %s372_s0 = inlined_call_operand.hbm [shape: f32[2,4,256], index: 0, kind: input, shape index: {}]   ;;  %s373_s1 = inlined_call_operand.hbm [shape: f32[1,1,4], index: 1, kind: output, shape index: {0}]   ;;  %s374_s2 = inlined_call_operand.hbm [shape: f32[1,1,4], index: 2, kind: output, shape index: {1}]  }
   0x1   :  { %9 = vsyncpa [#allocation4], 0 }
   0x2   :  { %10 = vsyncpa [#allocation7], 0  ;;  %s331_s9 = smov [#allocation2]  }
   0x3   :  { %s21_s10 = sshll.u32 %s331_s9, 4  ;;  %s22_s10 = int_to_ptr.vmem [resolvable:$true] %s21_s10 }
   0x4   :  { %s273_s11 = scalar_lea.vmem %s22_s10, 256  ;;  %p278_p1 = scmp.lt.s32.totalorder %s22_s10, %s22_s10 }
   0x5   :  { %p274_p0 = scmp.ne.s32.totalorder %s22_s10, %s273_s11  ;;  %p279_p2 = scmp.lt.s32.totalorder %s273_s11, %s273_s11 }
   0x7   :  { %p280_p3 = por %p279_p2, %p278_p1 }
   0x9   :  { %p281_p4 = pnand %p280_p3, %p274_p0 }
   0xb   :  { %284 = shalt.err (!%p281_p4)
}
   0xc   :  { %s332_s12 = smov 128   ;;  %s333_s13 = smov 8  }
   0xd   :  { %27 = dma.hbm_to_vmem [thread:$0]  %s372_s0, 256, %s22_s10, [#allocation3], %s332_s12, %s332_s12, %s333_s13  }
   0xe   :  { %325 = dma.done.wait [#allocation3], 256  }
   0xf   :  { %326 = vsyncadd [#allocation3], 4294967040  ;;  %vm41_vm0 = vcmask 1043456   ;;  %v33_v0 = vld [vmem:[#allocation2] sm:$0xff]  ;;  %v34_v1 = vld [vmem:[#allocation2 + $0x8] sm:$0xff]  ;;  %v75_v16 = vlaneseq  ;;  %s334_s0 = smov [#allocation5]  }
  0x10   :  { %v37_v2 = vcombine.high %v33_v0, %v33_v0  ;;  %v55_v3 = vsel %vm41_vm0, %v33_v0, inf  ;;  %v42_v4 = vsel %vm41_vm0, %v33_v0, -inf  ;;  %v38_v5 = vcombine.high %v34_v1, %v34_v1  ;;  %s235_s16 = sshll.u32 %s334_s0, 4  ;;  %s335_s17 = smov [#allocation6]   ;;  %s236_s16 = int_to_ptr.vmem [resolvable:$true] %s235_s16 }
  0x11   :  { %v60_v6 = vsel %vm41_vm0, %v34_v1, inf  ;;  %v47_v7 = vsel %vm41_vm0, %v34_v1, -inf  ;;  %v76_v19 = vand.u32 127, %v75_v16  ;;  %v78_v20 = vshrl.u32 %v75_v16, 7  ;;  %s245_s18 = sshll.u32 %s335_s17, 4  ;;  %s285_s19 = scalar_lea.vmem %s236_s16, 16  ;;  %s246_s18 = int_to_ptr.vmem [resolvable:$true] %s245_s18 }
  0x12   :  { %v56_v8 = vsel %vm41_vm0, %v37_v2, inf  ;;  %v43_v9 = vsel %vm41_vm0, %v37_v2, -inf  ;;  %v61_v10 = vsel %vm41_vm0, %v38_v5, inf  ;;  %v48_v11 = vsel %vm41_vm0, %v38_v5, -inf  ;;  %p286_p5 = scmp.ne.s32.totalorder %s236_s16, %s285_s19  ;;  %s289_s20 = scalar_lea.vmem %s236_s16, 32 }
  0x13   :  { %v57_v12 = vmin.f32 %v55_v3, %v56_v8  ;;  %v44_v13 = vmax.f32 %v42_v4, %v43_v9  ;;  %v62_v14 = vmin.f32 %v60_v6, %v61_v10  ;;  %v49_v15 = vmax.f32 %v47_v7, %v48_v11  ;;  %p290_p6 = scmp.lt.s32.totalorder %s236_s16, %s236_s16  ;;  %p291_p7 = scmp.lt.s32.totalorder %s289_s20, %s285_s19 }
  0x14   :  { %v79_v21 = vsub.s32 %v76_v19, %v78_v20  ;;  %vm82_vm1 = vcmask 24576  }
  0x15   :  { %58 = vmin.xlane.f32.xlu1 %v57_v12  ;;  %45 = vmax.xlane.f32.xlu0 %v44_v13  ;;  %p292_p8 = por %p291_p7, %p290_p6 }
  0x17   :  { %p293_p9 = pnand %p292_p8, %p286_p5 }
  0x19   :  { %63 = vmin.xlane.f32.xlu1 %v62_v14  ;;  %50 = vmax.xlane.f32.xlu0 %v49_v15 }
  0x9e   :  { %v59_v17 = vpop.xlane.xlu1 %58  ;;  %v46_v18 = vpop.xlane.xlu0 %45 }
  0x9f   :  { %v65_v24 = vsel %vm41_vm0, %v59_v17, inf  ;;  %v52_v25 = vsel %vm41_vm0, %v46_v18, -inf }
  0xa2   :  { %v64_v22 = vpop.xlane.xlu1 %63  ;;  %v51_v23 = vpop.xlane.xlu0 %50 }
  0xa3   :  { %v66_v26 = vsel %vm41_vm0, %v64_v22, inf  ;;  %v53_v27 = vsel %vm41_vm0, %v51_v23, -inf }
  0xa4   :  { %v67_v28 = vmin.f32 %v65_v24, %v66_v26  ;;  %v54_v29 = vmax.f32 %v52_v25, %v53_v27 }
  0xa6   :  { %v88_v30 = vrot.slane %v67_v28, %v79_v21  ;;  %v80_v31 = vrot.slane %v54_v29, %v79_v21 }
  0xa8   :  { %83 = vst.msk [vmem:[#allocation5] sm:$0x1] %vm82_vm1, %v80_v31  ;;  %90 = vst.msk [vmem:[#allocation6] sm:$0x1] %vm82_vm1, %v88_v30 }
  0xa9   :  { %296 = shalt.err (!%p293_p9)
}
  0xaa   :  { %238 = dma.vmem_to_hbm [thread:$0]  %s236_s16, 16, %s373_s1, [#allocation4]  }
  0xab   :  { %s305_s23 = scalar_lea.vmem %s246_s18, 16  ;;  %s309_s24 = scalar_lea.vmem %s246_s18, 32 }
  0xac   :  { %p306_p10 = scmp.ne.s32.totalorder %s246_s18, %s305_s23  ;;  %p310_p11 = scmp.lt.s32.totalorder %s246_s18, %s246_s18 }
  0xad   :  { %p311_p12 = scmp.lt.s32.totalorder %s309_s24, %s305_s23 }
  0xaf   :  { %p312_p13 = por %p311_p12, %p310_p11 }
  0xb1   :  { %p313_p0 = pnand %p312_p13, %p306_p10 }
  0xb3   :  { %316 = shalt.err (!%p313_p0)
}
  0xb4   :  { %248 = dma.vmem_to_hbm [thread:$0]  %s246_s18, 16, %s374_s2, [#allocation7]  }
  0xb5   :  { %327 = dma.done.wait [#allocation4], 16  }
  0xb6   :  { %328 = vsyncadd [#allocation4], 4294967280 }
  0xb7   :  { %329 = dma.done.wait [#allocation7], 16  }
  0xb8   :  { %330 = vsyncadd [#allocation7], 4294967280 }
  0xb9   :  { %255 = vsyncpa [#allocation3], 1 }
  0xba   :  { %256 = vsyncpa [#allocation4], 1 }
  0xbb   :  { %257 = vsyncpa [#allocation7], 1 }

</bundles_post_ra>
